<compile_context>
chip_gen: v5e
topology: v5e:2x2
jax: 0.10.0
libtpu: 0.0.40
codegen_flags: <defaults>
</compile_context>

<pallas_src>
import functools

import jax
import jax.numpy as jnp
from jax.experimental import pallas as pl
from jax.experimental.pallas import tpu as pltpu

EPS = 1e-5


# ---------------------------------------------------------------------------
# Pallas kernel (single invocation, everything resident in VMEM)
# ---------------------------------------------------------------------------
def ms_lstm_kernel(x_ref, w1_ref, w2_ref, slab_ref, out_ref, *, hidden):
    x = x_ref[...]                       # (B, 128)  fused padded input
    slab = slab_ref[...]                 # (8, 256)  b1/gamma/beta/b2/scale/offset

    # ---- fused first layer for all 5 MLPs: columns [I|F|O|C1~|C0^|pad] ----
    h = jnp.dot(x, w1_ref[...], preferred_element_type=jnp.float32) + slab[0:1, :]

    # training-mode BatchNorm1d over the batch (sublane) axis, biased variance
    mu = jnp.mean(h, axis=0, keepdims=True)
    var = jnp.mean((h - mu) ** 2, axis=0, keepdims=True)
    h = (h - mu) * jax.lax.rsqrt(var + EPS) * slab[1:2, :] + slab[2:3, :]
    h = jnp.maximum(h, 0.0)

    # ---- fused block-diagonal second layer (I/F/O blocks pre-scaled by 0.5) ----
    z = jnp.dot(h, w2_ref[...], preferred_element_type=jnp.float32) + slab[3:4, :]

    # single tanh over the 4*hidden (=128) gate lanes, then per-lane affine:
    #   sigmoid(a) = 0.5*tanh(a/2) + 0.5  (the /2 was baked into W2/b2 at pack time)
    g4 = 4 * hidden
    t = jnp.tanh(z[:, :g4])
    act = t * slab[4:5, :g4] + slab[5:6, :g4]

    gate_i = act[:, 0:hidden]
    gate_f = act[:, hidden:2 * hidden]
    gate_o = act[:, 2 * hidden:3 * hidden]
    c1_tilde = act[:, 3 * hidden:4 * hidden]
    c0_hat = z[:, g4:g4 + hidden]        # linear output (no activation)

    # ---- cell update ----
    c1 = gate_f * c0_hat + gate_i * c1_tilde
    h1 = gate_o * jnp.tanh(c1)

    # single lane-dense 128-wide store: [H1 | C1 | pad]
    pad = jnp.zeros((h1.shape[0], 2 * hidden), h1.dtype)
    out_ref[...] = jnp.concatenate([h1, c1, pad], axis=1)


# ---------------------------------------------------------------------------
# Wrapper (plain-JAX glue: TD encoder + lane concatenation + padding)
# ---------------------------------------------------------------------------
@jax.jit
def ms_lstm_cell(H0, C0, f01, f12, f1, pos, packed):
    B, hidden = H0.shape

    # td = ones_like(f1[:, -1]).unsqueeze(-1) * pos : constant across the batch.
    td = jnp.ones((B, 1), jnp.float32) * pos
    t_h = jnp.maximum(td @ packed["te_w1"] + packed["te_b1"], 0.0)
    tde = t_h @ packed["te_w2"] + packed["te_b2"]

    # fused input slab [H0 | f01 | f12 | f1 | tde | C0], zero-padded to 128 lanes
    x_all = jnp.concatenate([H0, f01, f12, f1, tde, C0], axis=-1)
    pad_in = packed["w1"].shape[0]
    d_all = x_all.shape[1]
    if d_all < pad_in:
        x_all = jnp.pad(x_all, ((0, 0), (0, pad_in - d_all)))

    args = (x_all, packed["w1"], packed["w2"], packed["slab"])
    out = pl.pallas_call(
        functools.partial(ms_lstm_kernel, hidden=hidden),
        in_specs=[pl.BlockSpec(memory_space=pltpu.MemorySpace.VMEM)] * len(args),
        out_specs=pl.BlockSpec(memory_space=pltpu.MemorySpace.VMEM),
        out_shape=jax.ShapeDtypeStruct((B, 4 * hidden), jnp.float32),
    )(*args)

    H1 = out[:, :hidden]
    C1 = out[:, hidden:2 * hidden]
    return H1, C1


# ---------------------------------------------------------------------------
# Deterministic parameter init (kaiming_normal_ weights, zero biases, BN identity)
# Raw params mirror the PyTorch module; pack_params builds the fused kernel layout.
# ---------------------------------------------------------------------------
def _kaiming_linear(key, fan_in, fan_out):
    std = (2.0 / fan_in) ** 0.5
    w_torch = jax.random.normal(key, (fan_out, fan_in), jnp.float32) * std
    return w_torch.T  # [in, out] so kernels compute x @ W


def make_params(key, f_con, f_t, hidden, dim_t):
    d_gate = hidden + f_con + dim_t + 2 * f_t
    d_c0 = hidden + f_t
    keys = iter(jax.random.split(key, 32))

    def lin(fi, fo):
        return _kaiming_linear(next(keys), fi, fo), jnp.zeros((1, fo), jnp.float32)

    params = []
    # TD_Encoder: MLP([1, dim_t, dim_t], bias=True), no norm
    w, b = lin(1, dim_t); params += [w, b]
    w, b = lin(dim_t, dim_t); params += [w, b]
    # mlp_I, mlp_F, mlp_O, mlp_C1_1, mlp_C0: Lin -> BN -> ReLU -> Lin
    for d_in in (d_gate, d_gate, d_gate, d_gate, d_c0):
        w1, b1 = lin(d_in, hidden)
        gamma = jnp.ones((1, hidden), jnp.float32)
        beta = jnp.zeros((1, hidden), jnp.float32)
        w2, b2 = lin(hidden, hidden)
        params += [w1, b1, gamma, beta, w2, b2]
    return params


def pack_params(params, f_con, f_t, hidden, dim_t):
    """Fuse all 5 MLPs into one padded first-layer matmul, one block-diagonal
    second-layer matmul (I/F/O blocks pre-scaled by 0.5 for the tanh->sigmoid
    identity) and one (8, 256) per-column slab."""
    p = list(params)
    te_w1, te_b1, te_w2, te_b2 = p[0:4]
    p_i, p_f, p_o, p_c1 = p[4:10], p[10:16], p[16:22], p[22:28]
    p_c0 = p[28:34]

    d_gate = hidden + f_con + dim_t + 2 * f_t       # gate-path input width
    d_all = d_gate + hidden                         # + C0
    pad_in = max(128, -(-d_all // 128) * 128)       # fused input lanes (128)
    d_mid = 5 * hidden                              # fused hidden width (160)
    pad_mid = max(128, -(-d_mid // 128) * 128)      # padded to 256 (full MXU tile)

    # row offsets inside x_all = [H0 | f01 | f12 | f1 | tde | C0 | pad]
    r_f01 = hidden
    r_c0 = d_gate

    gates = (p_i, p_f, p_o, p_c1)                   # column order [I|F|O|C1~]

    # ---- fused first layer -------------------------------------------------
    w1 = jnp.zeros((pad_in, pad_mid), jnp.float32)
    for g, pp in enumerate(gates):
        w1 = w1.at[:d_gate, g * hidden:(g + 1) * hidden].set(pp[0])
    # C0 path input order is [f01, C0]: scatter its rows to the fused layout
    w1 = w1.at[r_f01:r_f01 + f_t, 4 * hidden:5 * hidden].set(p_c0[0][:f_t])
    w1 = w1.at[r_c0:r_c0 + hidden, 4 * hidden:5 * hidden].set(p_c0[0][f_t:])

    # ---- fused block-diagonal second layer (0.5 scale baked into I/F/O) ----
    w2 = jnp.zeros((pad_mid, pad_mid), jnp.float32)
    blocks = [0.5 * p_i[4], 0.5 * p_f[4], 0.5 * p_o[4], p_c1[4], p_c0[4]]
    for g, blk in enumerate(blocks):
        w2 = w2.at[g * hidden:(g + 1) * hidden, g * hidden:(g + 1) * hidden].set(blk)

    # ---- per-column slab ----------------------------------------------------
    def cat_pad(vals, pad_value=0.0):
        row = jnp.concatenate(vals, axis=1)[0]
        return jnp.pad(row, (0, pad_mid - row.shape[0]), constant_values=pad_value)

    b1_row = cat_pad([pp[1] for pp in gates] + [p_c0[1]])
    gamma_row = cat_pad([pp[2] for pp in gates] + [p_c0[2]], pad_value=1.0)
    beta_row = cat_pad([pp[3] for pp in gates] + [p_c0[3]])
    b2_row = cat_pad([0.5 * p_i[5], 0.5 * p_f[5], 0.5 * p_o[5], p_c1[5], p_c0[5]])

    scale_row = jnp.zeros((pad_mid,), jnp.float32)
    scale_row = scale_row.at[:3 * hidden].set(0.5)              # sigmoid lanes
    scale_row = scale_row.at[3 * hidden:4 * hidden].set(1.0)    # tanh lanes
    offset_row = jnp.zeros((pad_mid,), jnp.float32)
    offset_row = offset_row.at[:3 * hidden].set(0.5)

    slab = jnp.zeros((8, pad_mid), jnp.float32)
    slab = slab.at[0].set(b1_row)
    slab = slab.at[1].set(gamma_row)
    slab = slab.at[2].set(beta_row)
    slab = slab.at[3].set(b2_row)
    slab = slab.at[4].set(scale_row)
    slab = slab.at[5].set(offset_row)

    return {
        "te_w1": te_w1, "te_b1": te_b1, "te_w2": te_w2, "te_b2": te_b2,
        "w1": w1, "w2": w2, "slab": slab,
    }


# ---------------------------------------------------------------------------
# Pure-JAX reference (same math, unfused) for a sanity check
# ---------------------------------------------------------------------------
def reference(H0, C0, f01, f12, f1, pos, params):
    p = list(params)
    te_w1, te_b1, te_w2, te_b2 = p[0:4]

    def gate_mlp(x, pp):
        w1, b1, g, be, w2, b2 = pp
        h = x @ w1 + b1
        mu = jnp.mean(h, axis=0, keepdims=True)
        var = jnp.mean((h - mu) ** 2, axis=0, keepdims=True)
        h = (h - mu) / jnp.sqrt(var + EPS) * g + be
        h = jnp.maximum(h, 0.0)
        return h @ w2 + b2

    B = H0.shape[0]
    td = jnp.ones((B, 1), jnp.float32) * pos
    tde = jnp.maximum(td @ te_w1 + te_b1, 0.0) @ te_w2 + te_b2
    xg = jnp.concatenate([H0, f01, f12, f1, tde], axis=-1)
    xc = jnp.concatenate([f01, C0], axis=-1)
    gi = jax.nn.sigmoid(gate_mlp(xg, p[4:10]))
    gf = jax.nn.sigmoid(gate_mlp(xg, p[10:16]))
    go = jax.nn.sigmoid(gate_mlp(xg, p[16:22]))
    c1t = jnp.tanh(gate_mlp(xg, p[22:28]))
    c0h = gate_mlp(xc, p[28:34])
    C1 = gf * c0h + gi * c1t
    H1 = go * jnp.tanh(C1)
    return H1, C1


if __name__ == "__main__":
    B, f_con, f_t, hidden, dim_t = 8, 16, 8, 32, 16
    pos = 3.0

    key = jax.random.PRNGKey(0)
    k_h, k_c, k_f01, k_f12, k_f1, k_p = jax.random.split(key, 6)

    H0 = jax.random.normal(k_h, (B, hidden), jnp.float32)
    C0 = jax.random.normal(k_c, (B, hidden), jnp.float32)
    f01 = jax.random.normal(k_f01, (B, f_t), jnp.float32)
    f12 = jax.random.normal(k_f12, (B, f_t), jnp.float32)
    f1 = jax.random.normal(k_f1, (B, f_con), jnp.float32)

    raw_params = make_params(k_p, f_con, f_t, hidden, dim_t)
    packed = pack_params(raw_params, f_con, f_t, hidden, dim_t)  # pack once, offline

    H1, C1 = ms_lstm_cell(H0, C0, f01, f12, f1, pos, packed)
    jax.block_until_ready((H1, C1))

    H1_ref, C1_ref = reference(H0, C0, f01, f12, f1, pos, raw_params)
    assert jnp.allclose(H1, H1_ref, rtol=1e-4, atol=1e-4)
    assert jnp.allclose(C1, C1_ref, rtol=1e-4, atol=1e-4)

    print("KERNEL_OK")
</pallas_src>

<mosaic_0001>
module attributes {stable_mosaic.version = 11 : i64} {
  func.func @ms_lstm_kernel(%arg0: memref<8x128xf32, #tpu.memory_space<vmem>>, %arg1: memref<128x256xf32, #tpu.memory_space<vmem>>, %arg2: memref<256x256xf32, #tpu.memory_space<vmem>>, %arg3: memref<8x256xf32, #tpu.memory_space<vmem>>, %arg4: memref<8x128xf32, #tpu.memory_space<vmem>>) attributes {dimension_semantics = [], scalar_prefetch = 0 : i64, scratch_operands = 0 : i64, tpu.core_type = #tpu.core_type<tc>} {
    %c0 = arith.constant 0 : index
    %c0_0 = arith.constant 0 : index
    %0 = vector.load %arg0[%c0, %c0_0] : memref<8x128xf32, #tpu.memory_space<vmem>>, vector<8x128xf32>
    %c0_1 = arith.constant 0 : index
    %c0_2 = arith.constant 0 : index
    %1 = vector.load %arg3[%c0_1, %c0_2] : memref<8x256xf32, #tpu.memory_space<vmem>>, vector<8x256xf32>
    %c0_3 = arith.constant 0 : index
    %c0_4 = arith.constant 0 : index
    %2 = vector.load %arg1[%c0_3, %c0_4] : memref<128x256xf32, #tpu.memory_space<vmem>>, vector<128x256xf32>
    %cst = arith.constant dense<0.000000e+00> : vector<8x256xf32>
    %3 = tpu.matmul %0, %2, %cst {dimension_numbers = #tpu.dot_dimension_numbers<[1], [0], [0], [1], [0, 0, 1, 1], [], []>} : vector<8x128xf32>, vector<128x256xf32>, vector<8x256xf32> -> vector<8x256xf32>
    %4 = vector.extract_strided_slice %1 {offsets = [0, 0], sizes = [1, 256], strides = [1, 1]} : vector<8x256xf32> to vector<1x256xf32>
    %5 = vector.broadcast %4 : vector<1x256xf32> to vector<8x256xf32>
    %6 = arith.addf %3, %5 : vector<8x256xf32>
    %cst_5 = arith.constant dense<0.000000e+00> : vector<256xf32>
    %7 = vector.multi_reduction <add>, %6, %cst_5 [0] : vector<8x256xf32> to vector<256xf32>
    %8 = vector.shape_cast %7 : vector<256xf32> to vector<1x256xf32>
    %cst_6 = arith.constant 8.000000e+00 : f32
    %9 = vector.broadcast %cst_6 : f32 to vector<1x256xf32>
    %10 = arith.divf %8, %9 : vector<1x256xf32>
    %11 = vector.broadcast %10 : vector<1x256xf32> to vector<8x256xf32>
    %12 = arith.subf %6, %11 : vector<8x256xf32>
    %13 = arith.mulf %12, %12 : vector<8x256xf32>
    %cst_7 = arith.constant dense<0.000000e+00> : vector<256xf32>
    %14 = vector.multi_reduction <add>, %13, %cst_7 [0] : vector<8x256xf32> to vector<256xf32>
    %15 = vector.shape_cast %14 : vector<256xf32> to vector<1x256xf32>
    %cst_8 = arith.constant 8.000000e+00 : f32
    %16 = vector.broadcast %cst_8 : f32 to vector<1x256xf32>
    %17 = arith.divf %15, %16 : vector<1x256xf32>
    %18 = vector.broadcast %10 : vector<1x256xf32> to vector<8x256xf32>
    %19 = arith.subf %6, %18 : vector<8x256xf32>
    %cst_9 = arith.constant 9.99999974E-6 : f32
    %20 = vector.broadcast %cst_9 : f32 to vector<1x256xf32>
    %21 = arith.addf %17, %20 : vector<1x256xf32>
    %22 = math.rsqrt %21 : vector<1x256xf32>
    %23 = vector.broadcast %22 : vector<1x256xf32> to vector<8x256xf32>
    %24 = arith.mulf %19, %23 : vector<8x256xf32>
    %25 = vector.extract_strided_slice %1 {offsets = [1, 0], sizes = [1, 256], strides = [1, 1]} : vector<8x256xf32> to vector<1x256xf32>
    %26 = vector.broadcast %25 : vector<1x256xf32> to vector<8x256xf32>
    %27 = arith.mulf %24, %26 : vector<8x256xf32>
    %28 = vector.extract_strided_slice %1 {offsets = [2, 0], sizes = [1, 256], strides = [1, 1]} : vector<8x256xf32> to vector<1x256xf32>
    %29 = vector.broadcast %28 : vector<1x256xf32> to vector<8x256xf32>
    %30 = arith.addf %27, %29 : vector<8x256xf32>
    %cst_10 = arith.constant 0.000000e+00 : f32
    %31 = vector.broadcast %cst_10 : f32 to vector<8x256xf32>
    %32 = arith.maximumf %30, %31 : vector<8x256xf32>
    %c0_11 = arith.constant 0 : index
    %c0_12 = arith.constant 0 : index
    %33 = vector.load %arg2[%c0_11, %c0_12] : memref<256x256xf32, #tpu.memory_space<vmem>>, vector<256x256xf32>
    %cst_13 = arith.constant dense<0.000000e+00> : vector<8x256xf32>
    %34 = tpu.matmul %32, %33, %cst_13 {dimension_numbers = #tpu.dot_dimension_numbers<[1], [0], [0], [1], [0, 0, 1, 1], [], []>} : vector<8x256xf32>, vector<256x256xf32>, vector<8x256xf32> -> vector<8x256xf32>
    %35 = vector.extract_strided_slice %1 {offsets = [3, 0], sizes = [1, 256], strides = [1, 1]} : vector<8x256xf32> to vector<1x256xf32>
    %36 = vector.broadcast %35 : vector<1x256xf32> to vector<8x256xf32>
    %37 = arith.addf %34, %36 : vector<8x256xf32>
    %38 = vector.extract_strided_slice %37 {offsets = [0, 0], sizes = [8, 128], strides = [1, 1]} : vector<8x256xf32> to vector<8x128xf32>
    %39 = math.tanh %38 : vector<8x128xf32>
    %40 = vector.extract_strided_slice %1 {offsets = [4, 0], sizes = [1, 128], strides = [1, 1]} : vector<8x256xf32> to vector<1x128xf32>
    %41 = vector.broadcast %40 : vector<1x128xf32> to vector<8x128xf32>
    %42 = arith.mulf %39, %41 : vector<8x128xf32>
    %43 = vector.extract_strided_slice %1 {offsets = [5, 0], sizes = [1, 128], strides = [1, 1]} : vector<8x256xf32> to vector<1x128xf32>
    %44 = vector.broadcast %43 : vector<1x128xf32> to vector<8x128xf32>
    %45 = arith.addf %42, %44 : vector<8x128xf32>
    %46 = vector.extract_strided_slice %45 {offsets = [0, 0], sizes = [8, 32], strides = [1, 1]} : vector<8x128xf32> to vector<8x32xf32>
    %47 = vector.extract_strided_slice %45 {offsets = [0, 32], sizes = [8, 32], strides = [1, 1]} : vector<8x128xf32> to vector<8x32xf32>
    %48 = vector.extract_strided_slice %45 {offsets = [0, 64], sizes = [8, 32], strides = [1, 1]} : vector<8x128xf32> to vector<8x32xf32>
    %49 = vector.extract_strided_slice %45 {offsets = [0, 96], sizes = [8, 32], strides = [1, 1]} : vector<8x128xf32> to vector<8x32xf32>
    %50 = vector.extract_strided_slice %37 {offsets = [0, 128], sizes = [8, 32], strides = [1, 1]} : vector<8x256xf32> to vector<8x32xf32>
    %51 = arith.mulf %47, %50 : vector<8x32xf32>
    %52 = arith.mulf %46, %49 : vector<8x32xf32>
    %53 = arith.addf %51, %52 : vector<8x32xf32>
    %54 = math.tanh %53 : vector<8x32xf32>
    %55 = arith.mulf %48, %54 : vector<8x32xf32>
    %cst_14 = arith.constant 0.000000e+00 : f32
    %56 = vector.broadcast %cst_14 : f32 to vector<8x64xf32>
    %57 = tpu.concatenate %55, %53, %56 in 1 : vector<8x32xf32>, vector<8x32xf32>, vector<8x64xf32> -> vector<8x128xf32>
    %c0_15 = arith.constant 0 : index
    %c0_16 = arith.constant 0 : index
    %58 = vector.load %arg4[%c0_15, %c0_16] : memref<8x128xf32, #tpu.memory_space<vmem>>, vector<8x128xf32>
    tpu.vector_store %arg4[%c0_15, %c0_16], %57 {strides = array<i32>} : memref<8x128xf32, #tpu.memory_space<vmem>>, vector<8x128xf32>,
    return
  }
}

</mosaic_0001>

<bundles_post_ra>
// kernel: ms_lstm_cell.1
= control target key start
LH: loop header
LB: loop body
LE: loop exit
PB: predicated region body
PF: predicated region fallthrough
CT: control target
= control target key end

     0   :  { %9 = vsyncpa [#allocation3], 0  ;;  %s554_s0 = inlined_call_operand.vmem [shape: f32[8,128], index: 0, kind: input, shape index: {}]   ;;  %s555_s1 = inlined_call_operand.hbm [shape: f32[128,256], index: 1, kind: input, shape index: {}]   ;;  %s556_s2 = inlined_call_operand.hbm [shape: f32[256,256], index: 2, kind: input, shape index: {}]   ;;  %s557_s3 = inlined_call_operand.vmem [shape: f32[8,256], index: 3, kind: input, shape index: {}]   ;;  %s558_s4 = inlined_call_operand.vmem [shape: f32[8,128], index: 4, kind: output, shape index: {}]  }
   0x1   :  { %s17_s17 = sshll.u32 %s555_s1, 4  ;;  %s18_s17 = int_to_ptr.hbm [resolvable:$true] %s17_s17 }
   0x2   :  { %10 = vsyncpa [#allocation5], 0  ;;  %s455_s18 = smov [#allocation2]   ;;  %s30_s22 = sshll.u32 %s556_s2, 4  ;;  %s31_s22 = int_to_ptr.hbm [resolvable:$true] %s30_s22 }
   0x3   :  { %s19_s19 = sshll.u32 %s455_s18, 4  ;;  %s456_s23 = smov 256   ;;  %s20_s19 = int_to_ptr.vmem [resolvable:$true] %s19_s19 }
   0x4   :  { %s457_s24 = smov 16   ;;  %s458_s25 = smov [#allocation4]  }
   0x5   :  { %25 = dma.hbm_to_vmem [thread:$0]  %s18_s17, 4096, %s20_s19, [#allocation3], %s456_s23, %s456_s23, %s457_s24  }
   0x6   :  { %s32_s26 = sshll.u32 %s458_s25, 4  ;;  %s33_s26 = int_to_ptr.vmem [resolvable:$true] %s32_s26 }
   0x7   :  { %38 = dma.hbm_to_vmem [thread:$0]  %s31_s22, 8192, %s33_s26, [#allocation5], %s456_s23, %s456_s23, %s457_s24  }
   0x8   :  { %451 = dma.done.wait [#allocation3], 4096  }
   0x9   :  { %452 = vsyncadd [#allocation3], 4294963200 }
   0xa   :  { %453 = dma.done.wait [#allocation5], 8192  }
   0xb   :  { %454 = vsyncadd [#allocation5], 4294959104  ;;  %v82_v0 = vld [vmem:[#allocation2 + $0xf0] sm:$0xff]  ;;  %v83_v1 = vld [vmem:[#allocation2 + $0xf8] sm:$0xff]  ;;  %v459_v33 = vmov 8.0   ;;  %vm375_vm7 = vcmask 261120  }
   0xc   :  { %v80_v2 = vld [vmem:[#allocation2 + $0xe0] sm:$0xff]  ;;  %86 = vmatpush.msra.mxu0 %v82_v0  ;;  %106 = vmatpush.msra.mxu1 %v83_v1  ;;  %v81_v3 = vld [vmem:[#allocation2 + $0xe8] sm:$0xff]  ;;  %v78_v4 = vld [vmem:[#allocation2 + $0xd0] sm:$0xff]  ;;  %393 = vrcp.f32 %v459_v33  ;;  %vm377_vm8 = vcmask 523264  }
   0xd   :  { %v79_v5 = vld [vmem:[#allocation2 + $0xd8] sm:$0xff]  ;;  %v76_v6 = vld [vmem:[#allocation2 + $0xc0] sm:$0xff]  ;;  %v77_v7 = vld [vmem:[#allocation2 + $0xc8] sm:$0xff] }
   0xe   :  { %87 = vmatpush.msra.mxu0 %v80_v2  ;;  %107 = vmatpush.msra.mxu1 %v81_v3  ;;  %v74_v8 = vld [vmem:[#allocation2 + $0xb0] sm:$0xff]  ;;  %v75_v9 = vld [vmem:[#allocation2 + $0xb8] sm:$0xff]  ;;  %v72_v10 = vld [vmem:[#allocation2 + $0xa0] sm:$0xff] }
   0xf   :  { %v73_v11 = vld [vmem:[#allocation2 + $0xa8] sm:$0xff]  ;;  %v70_v12 = vld [vmem:[#allocation2 + $0x90] sm:$0xff]  ;;  %v71_v13 = vld [vmem:[#allocation2 + $0x98] sm:$0xff] }
  0x10   :  { %88 = vmatpush.msra.mxu0 %v78_v4  ;;  %108 = vmatpush.msra.mxu1 %v79_v5  ;;  %v68_v14 = vld [vmem:[#allocation2 + $0x80] sm:$0xff]  ;;  %v69_v15 = vld [vmem:[#allocation2 + $0x88] sm:$0xff]  ;;  %v66_v16 = vld [vmem:[#allocation2 + $0x70] sm:$0xff] }
  0x11   :  { %v67_v17 = vld [vmem:[#allocation2 + $0x78] sm:$0xff]  ;;  %v64_v18 = vld [vmem:[#allocation2 + $0x60] sm:$0xff]  ;;  %v65_v19 = vld [vmem:[#allocation2 + $0x68] sm:$0xff] }
  0x12   :  { %89 = vmatpush.msra.mxu0 %v76_v6  ;;  %109 = vmatpush.msra.mxu1 %v77_v7  ;;  %v62_v20 = vld [vmem:[#allocation2 + $0x50] sm:$0xff]  ;;  %v63_v21 = vld [vmem:[#allocation2 + $0x58] sm:$0xff]  ;;  %v60_v22 = vld [vmem:[#allocation2 + $0x40] sm:$0xff]  ;;  %v496_v34 = vpop.eup %393 }
  0x13   :  { %v61_v23 = vld [vmem:[#allocation2 + $0x48] sm:$0xff]  ;;  %v58_v24 = vld [vmem:[#allocation2 + $0x30] sm:$0xff]  ;;  %v59_v25 = vld [vmem:[#allocation2 + $0x38] sm:$0xff]  ;;  %v139_v37 = vmul.f32 8.0, %v496_v34  ;;  %vm143_vm0 = vweird.f32 %v496_v34 }
  0x14   :  { %90 = vmatpush.msra.mxu0 %v74_v8  ;;  %110 = vmatpush.msra.mxu1 %v75_v9  ;;  %v56_v26 = vld [vmem:[#allocation2 + $0x20] sm:$0xff]  ;;  %v57_v27 = vld [vmem:[#allocation2 + $0x28] sm:$0xff]  ;;  %v54_v28 = vld [vmem:[#allocation2 + $0x10] sm:$0xff] }
  0x15   :  { %v55_v29 = vld [vmem:[#allocation2 + $0x18] sm:$0xff]  ;;  %v52_v30 = vld [vmem:[#allocation2] sm:$0xff]  ;;  %v53_v31 = vld [vmem:[#allocation2 + $0x8] sm:$0xff]  ;;  %v140_v44 = vsub.f32 1.0, %v139_v37 }
  0x16   :  { %91 = vmatpush.msra.mxu0 %v72_v10  ;;  %111 = vmatpush.msra.mxu1 %v73_v11  ;;  %v49_v32 = vld [vmem:[%s554_s0] sm:$0xff]  ;;  %v506_v36 = vld [vmem:[%s557_s3 + $0x8] sm:$0xff]  ;;  %v229_v40 = vld [vmem:[#allocation4 + $0xf0] sm:$0xff]  ;;  %s460_s0 = smov 32  }
  0x17   :  { %v501_v35 = vld [vmem:[%s557_s3] sm:$0xff]  ;;  %v85_v39 = vperm.slane %v506_v36, 0  ;;  %v261_v41 = vld [vmem:[#allocation4 + $0x1f0] sm:$0xff]  ;;  %v230_v42 = vld [vmem:[#allocation4 + $0xf8] sm:$0xff]  ;;  %265 = vmatpush.msra.mxu2 %v229_v40  ;;  %v141_v60 = vmul.f32 %v496_v34, %v140_v44  ;;  %s461_s3 = smov 64  }
  0x18   :  { %92 = vmatpush.msra.mxu0 %v70_v12  ;;  %112 = vmatpush.msra.mxu1 %v71_v13  ;;  %v84_v38 = vperm.slane %v501_v35, 0  ;;  %v262_v46 = vld [vmem:[#allocation4 + $0x1f8] sm:$0xff]  ;;  %v227_v49 = vld [vmem:[#allocation4 + $0xe0] sm:$0xff]  ;;  %v228_v51 = vld [vmem:[#allocation4 + $0xe8] sm:$0xff] }
  0x19   :  { %285 = vmatpush.msra.mxu3 %v261_v41  ;;  %v259_v50 = vld [vmem:[#allocation4 + $0x1e0] sm:$0xff]  ;;  %266 = vmatpush.msra.mxu2 %v227_v49  ;;  %v260_v52 = vld [vmem:[#allocation4 + $0x1e8] sm:$0xff]  ;;  %v225_v53 = vld [vmem:[#allocation4 + $0xd0] sm:$0xff]  ;;  %v142_v10 = vadd.f32 %v496_v34, %v141_v60 }
  0x1a   :  { %93 = vmatpush.msra.mxu0 %v68_v14  ;;  %113 = vmatpush.msra.mxu1 %v69_v15  ;;  %v257_v54 = vld [vmem:[#allocation4 + $0x1d0] sm:$0xff]  ;;  %v226_v57 = vld [vmem:[#allocation4 + $0xd8] sm:$0xff]  ;;  %v223_v59 = vld [vmem:[#allocation4 + $0xc0] sm:$0xff] }
  0x1b   :  { %286 = vmatpush.msra.mxu3 %v259_v50  ;;  %v258_v58 = vld [vmem:[#allocation4 + $0x1d8] sm:$0xff]  ;;  %267 = vmatpush.msra.mxu2 %v225_v53  ;;  %v255_v61 = vld [vmem:[#allocation4 + $0x1c0] sm:$0xff]  ;;  %v224_v62 = vld [vmem:[#allocation4 + $0xc8] sm:$0xff] }
  0x1c   :  { %94 = vmatpush.msra.mxu0 %v66_v16  ;;  %114 = vmatpush.msra.mxu1 %v67_v17  ;;  %v256_v63 = vld [vmem:[#allocation4 + $0x1c8] sm:$0xff]  ;;  %v221_v2 = vld [vmem:[#allocation4 + $0xb0] sm:$0xff]  ;;  %v222_v4 = vld [vmem:[#allocation4 + $0xb8] sm:$0xff] }
  0x1d   :  { %287 = vmatpush.msra.mxu3 %v257_v54  ;;  %v253_v3 = vld [vmem:[#allocation4 + $0x1b0] sm:$0xff]  ;;  %268 = vmatpush.msra.mxu2 %v223_v59  ;;  %v254_v5 = vld [vmem:[#allocation4 + $0x1b8] sm:$0xff]  ;;  %v219_v8 = vld [vmem:[#allocation4 + $0xa0] sm:$0xff] }
  0x1e   :  { %95 = vmatpush.msra.mxu0 %v64_v18  ;;  %115 = vmatpush.msra.mxu1 %v65_v19  ;;  %v251_v9 = vld [vmem:[#allocation4 + $0x1a0] sm:$0xff]  ;;  %v220_v11 = vld [vmem:[#allocation4 + $0xa8] sm:$0xff]  ;;  %v217_v15 = vld [vmem:[#allocation4 + $0x90] sm:$0xff] }
  0x1f   :  { %288 = vmatpush.msra.mxu3 %v255_v61  ;;  %269 = vmatpush.msra.mxu2 %v221_v2  ;;  %v252_v12 = vld [vmem:[#allocation4 + $0x1a8] sm:$0xff]  ;;  %v249_v16 = vld [vmem:[#allocation4 + $0x190] sm:$0xff]  ;;  %v218_v17 = vld [vmem:[#allocation4 + $0x98] sm:$0xff] }
  0x20   :  { %96 = vmatpush.msra.mxu0 %v62_v20  ;;  %116 = vmatpush.msra.mxu1 %v63_v21  ;;  %v250_v18 = vld [vmem:[#allocation4 + $0x198] sm:$0xff]  ;;  %v215_v21 = vld [vmem:[#allocation4 + $0x80] sm:$0xff]  ;;  %v205_v54 = vld [vmem:[#allocation4 + $0x30] sm:$0xff] }
  0x21   :  { %289 = vmatpush.msra.mxu3 %v253_v3  ;;  %270 = vmatpush.msra.mxu2 %v219_v8  ;;  %v243_v37 = vld [vmem:[#allocation4 + $0x160] sm:$0xff]  ;;  %v210_v44 = vld [vmem:[#allocation4 + $0x58] sm:$0xff]  ;;  %v201_v2 = vld [vmem:[#allocation4 + $0x10] sm:$0xff] }
  0x22   :  { %97 = vmatpush.msra.mxu0 %v60_v22  ;;  %117 = vmatpush.msra.mxu1 %v61_v23  ;;  %v247_v22 = vld [vmem:[#allocation4 + $0x180] sm:$0xff]  ;;  %v525_v23 = vsel %vm143_vm0, %v496_v34, %v142_v10  ;;  %v233_v3 = vld [vmem:[#allocation4 + $0x110] sm:$0xff]  ;;  %v200_v10 = vld [vmem:[#allocation4 + $0x8] sm:$0xff] }
  0x23   :  { %290 = vmatpush.msra.mxu3 %v251_v9  ;;  %271 = vmatpush.msra.mxu2 %v217_v15  ;;  %v211_v34 = vld [vmem:[#allocation4 + $0x60] sm:$0xff] }
  0x24   :  { %98 = vmatpush.msra.mxu0 %v58_v24  ;;  %118 = vmatpush.msra.mxu1 %v59_v25  ;;  %v216_v24 = vld [vmem:[#allocation4 + $0x88] sm:$0xff]  ;;  %v239_v50 = vld [vmem:[#allocation4 + $0x140] sm:$0xff] }
  0x25   :  { %291 = vmatpush.msra.mxu3 %v249_v16  ;;  %v248_v25 = vld [vmem:[#allocation4 + $0x188] sm:$0xff]  ;;  %272 = vmatpush.msra.mxu2 %v215_v21  ;;  %v203_v60 = vld [vmem:[#allocation4 + $0x20] sm:$0xff] }
  0x26   :  { %99 = vmatpush.msra.mxu0 %v56_v26  ;;  %119 = vmatpush.msra.mxu1 %v57_v27  ;;  %v235_v61 = vld [vmem:[#allocation4 + $0x120] sm:$0xff] }
  0x27   :  { %292 = vmatpush.msra.mxu3 %v247_v22  ;;  %v199_v8 = vld [vmem:[#allocation4] sm:$0xff] }
  0x28   :  { %100 = vmatpush.msra.mxu0 %v54_v28  ;;  %120 = vmatpush.msra.mxu1 %v55_v29  ;;  %v213_v28 = vld [vmem:[#allocation4 + $0x70] sm:$0xff]  ;;  %v231_v9 = vld [vmem:[#allocation4 + $0x100] sm:$0xff] }
  0x29   :  { %v245_v29 = vld [vmem:[#allocation4 + $0x170] sm:$0xff]  ;;  %273 = vmatpush.msra.mxu2 %v213_v28 }
  0x2a   :  { %101 = vmatpush.msra.mxu0 %v52_v30  ;;  %121 = vmatpush.msra.mxu1 %v53_v31  ;;  %v214_v30 = vld [vmem:[#allocation4 + $0x78] sm:$0xff] }
  0x2b   :  { %102 = vmatmul.f32.vlgmr.msra.gmra.mxu0 %v49_v32  ;;  %122 = vmatmul.f32.vlgmr.msra.gmra.mxu1 %v49_v32  ;;  %v246_v31 = vld [vmem:[#allocation4 + $0x178] sm:$0xff] }
  0x2c   :  { %305 = vmatpush.msrb.mxu0 %v230_v42  ;;  %325 = vmatpush.msrb.mxu1 %v262_v46  ;;  %v209_v42 = vld [vmem:[#allocation4 + $0x50] sm:$0xff] }
  0x2d   :  { %293 = vmatpush.msra.mxu3 %v245_v29  ;;  %274 = vmatpush.msra.mxu2 %v211_v34  ;;  %v190_v34 = vperm.slane %v506_v36, 1 }
  0x2e   :  { %306 = vmatpush.msrb.mxu0 %v228_v51  ;;  %326 = vmatpush.msrb.mxu1 %v260_v52  ;;  %v240_v51 = vld [vmem:[#allocation4 + $0x148] sm:$0xff] }
  0x2f   :  { %294 = vmatpush.msra.mxu3 %v243_v37  ;;  %275 = vmatpush.msra.mxu2 %v209_v42 }
  0x30   :  { %307 = vmatpush.msrb.mxu0 %v226_v57  ;;  %327 = vmatpush.msrb.mxu1 %v258_v58  ;;  %v238_v57 = vld [vmem:[#allocation4 + $0x138] sm:$0xff] }
  0x32   :  { %308 = vmatpush.msrb.mxu0 %v224_v62  ;;  %328 = vmatpush.msrb.mxu1 %v256_v63  ;;  %v204_v62 = vld [vmem:[#allocation4 + $0x28] sm:$0xff] }
  0x33   :  { %v236_v63 = vld [vmem:[#allocation4 + $0x128] sm:$0xff] }
  0x34   :  { %309 = vmatpush.msrb.mxu0 %v222_v4  ;;  %329 = vmatpush.msrb.mxu1 %v254_v5  ;;  %v202_v4 = vld [vmem:[#allocation4 + $0x18] sm:$0xff] }
  0x35   :  { %v234_v5 = vld [vmem:[#allocation4 + $0x118] sm:$0xff] }
  0x36   :  { %310 = vmatpush.msrb.mxu0 %v220_v11  ;;  %330 = vmatpush.msrb.mxu1 %v252_v12  ;;  %v232_v11 = vld [vmem:[#allocation4 + $0x108] sm:$0xff] }
  0x38   :  { %311 = vmatpush.msrb.mxu0 %v218_v17  ;;  %331 = vmatpush.msrb.mxu1 %v250_v18 }
  0x3a   :  { %312 = vmatpush.msrb.mxu0 %v216_v24  ;;  %332 = vmatpush.msrb.mxu1 %v248_v25 }
  0x3c   :  { %313 = vmatpush.msrb.mxu0 %v214_v30  ;;  %333 = vmatpush.msrb.mxu1 %v246_v31 }
  0xa8   :  { %v103_v43 = vpop.f32.mrf.mxu0  ;;  %v123_v45 = vpop.f32.mrf.mxu1 }
  0xa9   :  { %v511_v47 = vadd.f32 %v103_v43, %v84_v38  ;;  %v513_v48 = vadd.f32 %v123_v45, %v85_v39  ;;  %v212_v38 = vld [vmem:[#allocation4 + $0x68] sm:$0xff]  ;;  %v241_v43 = vld [vmem:[#allocation4 + $0x150] sm:$0xff]  ;;  %v242_v45 = vld [vmem:[#allocation4 + $0x158] sm:$0xff] }
  0xaa   :  { %v244_v39 = vld [vmem:[#allocation4 + $0x168] sm:$0xff]  ;;  %314 = vmatpush.msrb.mxu0 %v212_v38  ;;  %295 = vmatpush.msra.mxu3 %v241_v43  ;;  %v193_v38 = vperm.slane %v501_v35, 2  ;;  %v194_v43 = vperm.slane %v506_v36, 2 }
  0xab   :  { %v126_v55 = vrot.slane %v511_v47, 4  ;;  %v132_v56 = vrot.slane %v513_v48, 4  ;;  %334 = vmatpush.msrb.mxu1 %v244_v39 }
  0xac   :  { %315 = vmatpush.msrb.mxu0 %v210_v44  ;;  %296 = vmatpush.msra.mxu3 %v239_v50 }
  0xad   :  { %v127_v0 = vadd.f32 %v126_v55, %v511_v47  ;;  %v133_v1 = vadd.f32 %v132_v56, %v513_v48  ;;  %335 = vmatpush.msrb.mxu1 %v242_v45  ;;  %v237_v55 = vld [vmem:[#allocation4 + $0x130] sm:$0xff]  ;;  %v206_v56 = vld [vmem:[#allocation4 + $0x38] sm:$0xff] }
  0xae   :  { %297 = vmatpush.msra.mxu3 %v237_v55 }
  0xaf   :  { %v128_v6 = vrot.slane %v127_v0, 2  ;;  %v134_v7 = vrot.slane %v133_v1, 2  ;;  %336 = vmatpush.msrb.mxu1 %v240_v51 }
  0xb0   :  { %298 = vmatpush.msra.mxu3 %v235_v61 }
  0xb1   :  { %v129_v13 = vadd.f32 %v128_v6, %v127_v0  ;;  %v135_v14 = vadd.f32 %v134_v7, %v133_v1  ;;  %337 = vmatpush.msrb.mxu1 %v238_v57  ;;  %v264_v57 = vperm.slane %v506_v36, 3 }
  0xb2   :  { %299 = vmatpush.msra.mxu3 %v233_v3 }
  0xb3   :  { %v130_v19 = vrot.slane %v129_v13, 1  ;;  %v136_v20 = vrot.slane %v135_v14, 1  ;;  %338 = vmatpush.msrb.mxu1 %v236_v63 }
  0xb4   :  { %300 = vmatpush.msra.mxu3 %v231_v9 }
  0xb5   :  { %v131_v26 = vadd.f32 %v130_v19, %v129_v13  ;;  %v137_v27 = vadd.f32 %v136_v20, %v135_v14  ;;  %339 = vmatpush.msrb.mxu1 %v234_v5 }
  0xb7   :  { %v145_v32 = vmul.f32 %v525_v23, %v131_v26  ;;  %v146_v33 = vmul.f32 %v525_v23, %v137_v27  ;;  %340 = vmatpush.msrb.mxu1 %v232_v11 }
  0xb9   :  { %v530_v40 = vsub.f32 %v511_v47, %v145_v32  ;;  %v533_v41 = vsub.f32 %v513_v48, %v146_v33  ;;  %v207_v47 = vld [vmem:[#allocation4 + $0x40] sm:$0xff]  ;;  %v208_v48 = vld [vmem:[#allocation4 + $0x48] sm:$0xff] }
  0xba   :  { %276 = vmatpush.msra.mxu2 %v207_v47  ;;  %316 = vmatpush.msrb.mxu0 %v208_v48  ;;  %v263_v48 = vperm.slane %v501_v35, 3 }
  0xbb   :  { %v149_v46 = vmul.f32 %v530_v40, %v530_v40  ;;  %v150_v49 = vmul.f32 %v533_v41, %v533_v41 }
  0xbc   :  { %277 = vmatpush.msra.mxu2 %v205_v54  ;;  %317 = vmatpush.msrb.mxu0 %v206_v56  ;;  %v348_v54 = vperm.slane %v501_v35, 5 }
  0xbd   :  { %v151_v52 = vrot.slane %v149_v46, 4  ;;  %v157_v53 = vrot.slane %v150_v49, 4 }
  0xbe   :  { %278 = vmatpush.msra.mxu2 %v203_v60  ;;  %318 = vmatpush.msrb.mxu0 %v204_v62 }
  0xbf   :  { %v152_v58 = vadd.f32 %v151_v52, %v149_v46  ;;  %v158_v59 = vadd.f32 %v157_v53, %v150_v49 }
  0xc0   :  { %279 = vmatpush.msra.mxu2 %v201_v2  ;;  %319 = vmatpush.msrb.mxu0 %v202_v4 }
  0xc1   :  { %v153_v0 = vrot.slane %v152_v58, 2  ;;  %v159_v1 = vrot.slane %v158_v59, 2 }
  0xc2   :  { %280 = vmatpush.msra.mxu2 %v199_v8  ;;  %320 = vmatpush.msrb.mxu0 %v200_v10 }
  0xc3   :  { %v154_v6 = vadd.f32 %v153_v0, %v152_v58  ;;  %v160_v7 = vadd.f32 %v159_v1, %v158_v59 }
  0xc5   :  { %v155_v12 = vrot.slane %v154_v6, 1  ;;  %v161_v13 = vrot.slane %v160_v7, 1 }
  0xc7   :  { %v156_v14 = vadd.f32 %v155_v12, %v154_v6  ;;  %v162_v15 = vadd.f32 %v161_v13, %v160_v7 }
  0xc9   :  { %v163_v16 = vmul.f32 %v156_v14, %v525_v23  ;;  %v164_v17 = vmul.f32 %v162_v15, %v525_v23  ;;  %v189_v23 = vperm.slane %v501_v35, 1 }
  0xcb   :  { %v165_v18 = vadd.f32 1e-05, %v163_v16  ;;  %v166_v19 = vadd.f32 1e-05, %v164_v17 }
  0xcd   :  { %395 = vrsqrt.f32 %v165_v18  ;;  %vm173_vm3 = vweird.f32 %v165_v18  ;;  %vm183_vm5 = vweird.f32 %v166_v19 }
  0xce   :  { %397 = vrsqrt.f32 %v166_v19 }
  0xd3   :  { %v396_v20 = vpop.eup %395 }
  0xd4   :  { %v398_v21 = vpop.eup %397  ;;  %v168_v22 = vmul.f32 %v396_v20, %v165_v18  ;;  %vm174_vm1 = vweird.f32 %v396_v20 }
  0xd5   :  { %v178_v24 = vmul.f32 %v398_v21, %v166_v19  ;;  %vm184_vm2 = vweird.f32 %v398_v21  ;;  %vm175_vm4 = vmor %vm173_vm3, %vm174_vm1 }
  0xd6   :  { %v169_v25 = vmul.f32 %v396_v20, %v168_v22  ;;  %vm185_vm6 = vmor %vm183_vm5, %vm184_vm2 }
  0xd7   :  { %v179_v26 = vmul.f32 %v398_v21, %v178_v24 }
  0xd8   :  { %v170_v27 = vmul.f32 0.5, %v169_v25 }
  0xd9   :  { %v180_v28 = vmul.f32 0.5, %v179_v26 }
  0xda   :  { %v171_v29 = vsub.f32 1.5, %v170_v27 }
  0xdb   :  { %v181_v30 = vsub.f32 1.5, %v180_v28 }
  0xdc   :  { %v172_v31 = vmul.f32 %v396_v20, %v171_v29 }
  0xdd   :  { %v182_v32 = vmul.f32 %v398_v21, %v181_v30 }
  0xde   :  { %v176_v33 = vsel %vm175_vm4, %v396_v20, %v172_v31 }
  0xdf   :  { %v187_v37 = vmul.f32 %v176_v33, %v530_v40  ;;  %v186_v39 = vsel %vm185_vm6, %v398_v21, %v182_v32 }
  0xe0   :  { %v188_v42 = vmul.f32 %v186_v39, %v533_v41  ;;  %v346_v41 = vperm.slane %v501_v35, 4 }
  0xe1   :  { %v191_v44 = vmul.f32 %v189_v23, %v187_v37 }
  0xe2   :  { %v192_v45 = vmul.f32 %v190_v34, %v188_v42 }
  0xe3   :  { %v195_v46 = vadd.f32 %v193_v38, %v191_v44 }
  0xe4   :  { %v196_v49 = vadd.f32 %v194_v43, %v192_v45 }
  0xe5   :  { %v197_v47 = vmax.f32 %v195_v46, 0.0 }
  0xe6   :  { %v198_v50 = vmax.f32 %v196_v49, 0.0 }
  0xe7   :  { %281 = vmatmul.f32.vlgmr.msra.gmra.mxu2 %v197_v47  ;;  %321 = vmatmul.f32.vlgmr.msrb.gmra.mxu0 %v197_v47 }
  0xe8   :  { %301 = vmatmul.f32.vlgmr.msra.gmra.mxu3 %v198_v50  ;;  %341 = vmatmul.f32.vlgmr.msrb.gmra.mxu1 %v198_v50 }
 0x164   :  { %v322_v59 = vpop.f32.mrf.mxu0 }
 0x165   :  { %v323_v60 = vadd.f32 %v322_v59, %v264_v57  ;;  %v342_v61 = vpop.f32.mrf.mxu1 }
 0x167   :  { %v343_v62 = vadd.f32 %v342_v61, %v323_v60 }
 0x16a   :  { %v282_v40 = vpop.f32.mrf.mxu2 }
 0x16b   :  { %v283_v51 = vadd.f32 %v282_v40, %v263_v48  ;;  %v302_v52 = vpop.f32.mrf.mxu3 }
 0x16d   :  { %v303_v53 = vadd.f32 %v302_v52, %v283_v51 }
 0x16f   :  { %399 = vtanh.f32 %v303_v53 }
 0x175   :  { %v400_v55 = vpop.eup %399 }
 0x176   :  { %v347_v56 = vmul.f32 %v400_v55, %v346_v41 }
 0x178   :  { %v349_v58 = vadd.f32 %v348_v54, %v347_v56 }
 0x17a   :  { %356 = vrot.lane.b32.xlu0 %v349_v58, %s460_s0 }
 0x182   :  { %351 = vrot.lane.b32.xlu0 %v343_v62, %s460_s0 }
 0x1ec   :  { %v357_v63 = vpop.permute.xlu0 %356 }
 0x1ed   :  { %v359_v0 = vmul.f32 %v357_v63, %v349_v58 }
 0x1ef   :  { %361 = vrot.lane.b32.xlu1 %v359_v0, %s460_s0 }
 0x1f4   :  { %v352_v1 = vpop.permute.xlu0 %351 }
 0x1f5   :  { %v354_v2 = vmul.f32 %v352_v1, %v349_v58 }
 0x261   :  { %v362_v3 = vpop.permute.xlu1 %361 }
 0x262   :  { %v364_v4 = vadd.f32 %v362_v3, %v354_v2 }
 0x264   :  { %401 = vtanh.f32 %v364_v4 }
 0x26a   :  { %v402_v35 = vpop.eup %401 }
 0x26b   :  { %367 = vrot.lane.b32.xlu1 %v402_v35, %s460_s0 }
 0x2dd   :  { %v368_v5 = vpop.permute.xlu1 %367 }
 0x2de   :  { %v370_v36 = vmul.f32 %v368_v5, %v349_v58 }
 0x2e0   :  { %372 = vrot.lane.b32.xlu2 %v370_v36, %s461_s3 }
 0x33a   :  { %v373_v6 = vpop.permute.xlu2 %372 }
 0x33b   :  { %v376_v7 = vsel %vm375_vm7, %v373_v6, %v364_v4 }
 0x33c   :  { %v378_v8 = vsel %vm377_vm8, %v376_v7, 0.0 }
 0x33d   :  { %379 = vst [vmem:[%s558_s4] sm:$0xff] %v378_v8 }
 0x33e   :  { %384 = vsyncpa [#allocation3], 1 }
 0x33f   :  { %385 = vsyncpa [#allocation5], 1 }

</bundles_post_ra>
